<compile_context>
chip_gen: v7x
topology: tpu7x:2x2x1
jax: 0.10.0
libtpu: 0.0.40
codegen_flags: <defaults>
</compile_context>

<pallas_src>
import functools

import jax
import jax.numpy as jnp
from jax import lax
from jax.experimental import pallas as pl
from jax.experimental.pallas import tpu as pltpu


def _cross_entropy_kernel(x_ref, lab_ref, part_ref, *, batch_size, stable):
    pid = pl.program_id(0)

    x = x_ref[...].astype(jnp.float32)          # (TB, N) logits block
    tb, n = x.shape

    # Labels are resident in VMEM for the whole grid; pull this block's rows
    # out with an aligned dynamic sublane slice (no per-step labels DMA).
    if lab_ref.shape[0] == tb:
        lab = lab_ref[...]                       # (TB, 1) int32
    else:
        start = pl.multiple_of(pid * tb, 8)
        lab = lab_ref[pl.ds(start, tb), :]       # (TB, 1) int32

    # Softmax over the label (lane) axis.
    if stable:
        m = jnp.max(x, axis=1, keepdims=True)    # (TB, 1)
        x = x - m
    e = jnp.exp(x)                               # (TB, N)
    s = jnp.sum(e, axis=1, keepdims=True)        # (TB, 1)
    inv = pl.reciprocal(s, approx=True)          # EUP, per-row only
    inv = inv * (2.0 - s * inv)                  # 1 Newton step -> ~f32 exact
    p = e * inv                                  # (TB, N) softmax probs

    # Term 1: log(sum_n exp(p[b, n]))  (exactly as the reference module).
    lse = jnp.log(jnp.sum(jnp.exp(p), axis=1, keepdims=True))    # (TB, 1)

    # Term 2: p at the target label (iota == label, no dense one-hot stream).
    col = lax.broadcasted_iota(jnp.int32, (tb, n), 1)
    hit = jnp.sum(jnp.where(col == lab, p, 0.0), axis=1, keepdims=True)

    loss = lse - hit                             # (TB, 1)

    # Mask padded rows of the last (partial) batch block.
    row = lax.broadcasted_iota(jnp.int32, (tb, 1), 0) + pid * tb
    loss = jnp.where(row < batch_size, loss, 0.0)

    # Per-block partial sum, written once, lane-dense (1, 128).
    partial = jnp.sum(loss, axis=0, keepdims=True)               # (1, 1)
    part_ref[...] = jnp.broadcast_to(partial, part_ref.shape)


def cross_entropy(logits, labels, *, block_rows=None, stable=True):
    """logits: (B, N) float (f32/bf16/...); labels: (B,) int class indices.

    Returns the scalar f32 loss matching the reference module's semantics.
    """
    B, N = logits.shape
    assert labels.shape == (B,)

    elem_bytes = jnp.dtype(logits.dtype).itemsize
    # Sublane multiple respecting packed tiling: 8 rows for 32-bit dtypes,
    # 16 for 16-bit, 32 for 8-bit.
    sub = max(8, 32 // elem_bytes)

    if block_rows is None:
        # Stream up to ~8 MiB of logits (HBM bytes) per grid step, but cap the
        # f32 working set (exp/prob temporaries) at ~6 MiB so double-buffered
        # inputs + compiler scratch stay comfortably under the 48 MiB VMEM
        # limit on every generation (including v7x's 64 MiB physical VMEM).
        rows_cap = min((8 << 20) // (N * elem_bytes), (6 << 20) // (N * 4))
        rows_cap = max(sub, (rows_cap // sub) * sub)
        if B <= sub:
            block_rows = B                       # single full-array block
        else:
            # Guarantee >= 2 grid steps so the "parallel" batch axis can be
            # sharded across both TensorCores on v7x.
            half = -(-B // 2)                    # ceil(B / 2)
            half = -(-half // sub) * sub         # round up to sublane multiple
            block_rows = min(rows_cap, half)

    num_blocks = pl.cdiv(B, block_rows)

    # Pad labels so the in-kernel dynamic slice of the resident labels buffer
    # never reads past the allocation on the last partial block. Padded rows
    # are masked out in the kernel (row < batch_size).
    padded_b = num_blocks * block_rows
    labels2d = jnp.zeros((padded_b, 1), jnp.int32)
    labels2d = labels2d.at[:B, 0].set(labels.astype(jnp.int32))

    partials = pl.pallas_call(
        functools.partial(_cross_entropy_kernel, batch_size=B, stable=stable),
        out_shape=jax.ShapeDtypeStruct((num_blocks, 128), jnp.float32),
        grid_spec=pltpu.PrefetchScalarGridSpec(
            num_scalar_prefetch=0,
            grid=(num_blocks,),
            in_specs=[
                # Pipelined (double-buffered) logits stream.
                pl.BlockSpec((block_rows, N), lambda i: (i, 0)),
                # Labels: repeated block index -> fetched once, kept resident.
                pl.BlockSpec((padded_b, 1), lambda i: (0, 0)),
            ],
            out_specs=pl.BlockSpec((1, 128), lambda i: (i, 0)),
        ),
        compiler_params=pltpu.CompilerParams(
            dimension_semantics=("parallel",),
            vmem_limit_bytes=48 * 1024 * 1024,
        ),
    )(logits, labels2d)

    # Tiny final reduction in the wrapper (per-block partial sums -> mean).
    return jnp.sum(partials[:, 0]) / B


def _reference(output, target):
    # Pure-JAX reference mirroring the PyTorch loop semantics (dense target).
    p = jax.nn.softmax(output.astype(jnp.float32), axis=1)
    lse = jnp.log(jnp.sum(jnp.exp(p), axis=1))
    hit = jnp.sum(jnp.where(target == 1.0, p, 0.0), axis=1)
    return jnp.mean(lse - hit)


if __name__ == "__main__":
    key = jax.random.PRNGKey(0)
    k1, k2, k3, k4, k5, k6 = jax.random.split(key, 6)

    # Case 1: small, tile-friendly (8 x 128), single full-array block.
    B1, N1 = 8, 128
    logits1 = jax.random.normal(k1, (B1, N1), dtype=jnp.float32)
    labels1 = jax.random.randint(k2, (B1,), 0, N1)
    target1 = jax.nn.one_hot(labels1, N1, dtype=jnp.float32)
    got1 = jax.block_until_ready(cross_entropy(logits1, labels1))
    want1 = jax.block_until_ready(_reference(logits1, target1))
    assert jnp.allclose(got1, want1, atol=2e-5, rtol=1e-5), (got1, want1)

    # Case 2: multi-block grid with a partial last block (exercises the
    # padded-row masking and the resident-labels dynamic slice).
    B2, N2 = 20, 384
    logits2 = jax.random.normal(k3, (B2, N2), dtype=jnp.float32)
    labels2 = jax.random.randint(k4, (B2,), 0, N2)
    target2 = jax.nn.one_hot(labels2, N2, dtype=jnp.float32)
    got2 = jax.block_until_ready(cross_entropy(logits2, labels2))
    want2 = jax.block_until_ready(_reference(logits2, target2))
    assert jnp.allclose(got2, want2, atol=2e-5, rtol=1e-5), (got2, want2)

    # Case 3: bf16 logits ingested directly (halved HBM stream), even 2-block
    # split across the parallel batch axis.
    B3, N3 = 32, 256
    logits3 = jax.random.normal(k5, (B3, N3), dtype=jnp.bfloat16)
    labels3 = jax.random.randint(k6, (B3,), 0, N3)
    target3 = jax.nn.one_hot(labels3, N3, dtype=jnp.float32)
    got3 = jax.block_until_ready(cross_entropy(logits3, labels3))
    want3 = jax.block_until_ready(_reference(logits3, target3))
    assert jnp.allclose(got3, want3, atol=2e-5, rtol=1e-5), (got3, want3)

    print("KERNEL_OK")
</pallas_src>

<mosaic_0001>
module attributes {stable_mosaic.version = 11 : i64} {
  func.func @_cross_entropy_kernel(%arg0: i32, %arg1: memref<8x128xf32, #tpu.memory_space<vmem>>, %arg2: memref<8x1xi32, #tpu.memory_space<vmem>>, %arg3: memref<1x128xf32, #tpu.memory_space<vmem>>) attributes {dimension_semantics = [#tpu.dimension_semantics<parallel>], iteration_bounds = array<i64: 1>, scalar_prefetch = 0 : i64, scratch_operands = 0 : i64, tpu.core_type = #tpu.core_type<tc>, window_params = [{transform_indices = @transform_0, window_bounds = array<i64: 8, 128>}, {pipeline_mode = #tpu.pipeline_mode<synchronous>, transform_indices = @transform_1, window_bounds = array<i64: 8, 1>}, {transform_indices = @transform_2, window_bounds = array<i64: 1, 128>}]} {
    %c0 = arith.constant 0 : index
    %c0_0 = arith.constant 0 : index
    %0 = vector.load %arg1[%c0, %c0_0] : memref<8x128xf32, #tpu.memory_space<vmem>>, vector<8x128xf32>
    %c0_1 = arith.constant 0 : index
    %c0_2 = arith.constant 0 : index
    %1 = vector.load %arg2[%c0_1, %c0_2] : memref<8x1xi32, #tpu.memory_space<vmem>>, vector<8x1xi32>
    %cst = arith.constant dense<0xFF800000> : vector<8xf32>
    %2 = vector.multi_reduction <maximumf>, %0, %cst [1] : vector<8x128xf32> to vector<8xf32>
    %3 = vector.shape_cast %2 : vector<8xf32> to vector<8x1xf32>
    %4 = vector.broadcast %3 : vector<8x1xf32> to vector<8x128xf32>
    %5 = arith.subf %0, %4 : vector<8x128xf32>
    %6 = math.exp %5 : vector<8x128xf32>
    %cst_3 = arith.constant dense<0.000000e+00> : vector<8xf32>
    %7 = vector.multi_reduction <add>, %6, %cst_3 [1] : vector<8x128xf32> to vector<8xf32>
    %8 = vector.shape_cast %7 : vector<8xf32> to vector<8x1xf32>
    %9 = tpu.reciprocal %8 {approx = true} : vector<8x1xf32> -> vector<8x1xf32>
    %10 = arith.mulf %8, %9 : vector<8x1xf32>
    %cst_4 = arith.constant 2.000000e+00 : f32
    %11 = vector.broadcast %cst_4 : f32 to vector<8x1xf32>
    %12 = arith.subf %11, %10 : vector<8x1xf32>
    %13 = arith.mulf %9, %12 : vector<8x1xf32>
    %14 = vector.broadcast %13 : vector<8x1xf32> to vector<8x128xf32>
    %15 = arith.mulf %6, %14 : vector<8x128xf32>
    %16 = math.exp %15 : vector<8x128xf32>
    %cst_5 = arith.constant dense<0.000000e+00> : vector<8xf32>
    %17 = vector.multi_reduction <add>, %16, %cst_5 [1] : vector<8x128xf32> to vector<8xf32>
    %18 = vector.shape_cast %17 : vector<8xf32> to vector<8x1xf32>
    %19 = math.log %18 : vector<8x1xf32>
    %20 = tpu.iota {dimensions = array<i32: 1>} : vector<8x128xi32>
    %21 = vector.broadcast %1 : vector<8x1xi32> to vector<8x128xi32>
    %22 = arith.cmpi eq, %20, %21 : vector<8x128xi32>
    %cst_6 = arith.constant 0.000000e+00 : f32
    %23 = vector.broadcast %cst_6 : f32 to vector<8x128xf32>
    %24 = arith.select %22, %15, %23 : vector<8x128xi1>, vector<8x128xf32>
    %cst_7 = arith.constant dense<0.000000e+00> : vector<8xf32>
    %25 = vector.multi_reduction <add>, %24, %cst_7 [1] : vector<8x128xf32> to vector<8xf32>
    %26 = vector.shape_cast %25 : vector<8xf32> to vector<8x1xf32>
    %27 = arith.subf %19, %26 : vector<8x1xf32>
    %28 = tpu.iota {dimensions = array<i32: 0>} : vector<8x1xi32>
    %c8_i32 = arith.constant 8 : i32
    %29 = arith.muli %arg0, %c8_i32 : i32
    %30 = vector.broadcast %29 : i32 to vector<8x1xi32>
    %31 = arith.addi %28, %30 : vector<8x1xi32>
    %c8_i32_8 = arith.constant 8 : i32
    %32 = vector.broadcast %c8_i32_8 : i32 to vector<8x1xi32>
    %33 = arith.cmpi slt, %31, %32 : vector<8x1xi32>
    %cst_9 = arith.constant 0.000000e+00 : f32
    %34 = vector.broadcast %cst_9 : f32 to vector<8x1xf32>
    %35 = arith.select %33, %27, %34 : vector<8x1xi1>, vector<8x1xf32>
    %cst_10 = arith.constant dense<0.000000e+00> : vector<1xf32>
    %36 = vector.multi_reduction <add>, %35, %cst_10 [0] : vector<8x1xf32> to vector<1xf32>
    %37 = vector.shape_cast %36 : vector<1xf32> to vector<1x1xf32>
    %38 = vector.shape_cast %37 : vector<1x1xf32> to vector<1x1xf32>
    %39 = vector.broadcast %38 : vector<1x1xf32> to vector<1x128xf32>
    %c0_11 = arith.constant 0 : index
    %c0_12 = arith.constant 0 : index
    %40 = vector.load %arg3[%c0_11, %c0_12] : memref<1x128xf32, #tpu.memory_space<vmem>>, vector<1x128xf32>
    tpu.vector_store %arg3[%c0_11, %c0_12], %39 {strides = array<i32>} : memref<1x128xf32, #tpu.memory_space<vmem>>, vector<1x128xf32>,
    return
  }
  func.func @transform_0(%arg0: i32) -> (i32, i32) {
    %c0_i32 = arith.constant 0 : i32
    %c0_i32_0 = arith.constant 0 : i32
    return %arg0, %c0_i32 : i32, i32
  }
  func.func @transform_1(%arg0: i32) -> (i32, i32) {
    %c0_i32 = arith.constant 0 : i32
    %c0_i32_0 = arith.constant 0 : i32
    %c0_i32_1 = arith.constant 0 : i32
    return %c0_i32, %c0_i32_0 : i32, i32
  }
  func.func @transform_2(%arg0: i32) -> (i32, i32) {
    %c0_i32 = arith.constant 0 : i32
    %c0_i32_0 = arith.constant 0 : i32
    return %arg0, %c0_i32 : i32, i32
  }
}

</mosaic_0001>

<bundles_post_ra>
// kernel: tpu_custom_call.1
= control target key start
LH: loop header
LB: loop body
LE: loop exit
PB: predicated region body
PF: predicated region fallthrough
CT: control target
= control target key end

     0   :  { %s141_s0 = inlined_call_operand.vmem [shape: f32[8,128], index: 0, kind: input, shape index: {}]   ;;  %s142_s1 = inlined_call_operand.vmem [shape: s32[8,1], index: 1, kind: input, shape index: {}]   ;;  %s143_s2 = inlined_call_operand.hbm [shape: f32[1,128], index: 2, kind: output, shape index: {}]  }
   0x1   :  { %v12_v0 = vld [vmem:[%s141_s0] sm:$0xff] }
   0x2   :  { %7 = vsyncpa [#allocation3], 0  ;;  %14 = vmax.xlane.f32.xlu0 %v12_v0  ;;  %v13_v1 = vld [vmem:[%s142_s1] sm:$0xff]  ;;  %v106_v2 = vmov 0   ;;  %v32_v8 = vlaneseq  ;;  %s107_s0 = smov [#allocation2]  }
   0x3   :  { %72 = vset.pattern.permute.xlu1 %v106_v2  ;;  %73 = vset.pattern.permute.xlu0 %v106_v2  ;;  %s62_s1 = sshll.u32 %s107_s0, 4  ;;  %s63_s1 = int_to_ptr.vmem [resolvable:$true] %s62_s1 }
   0x4   :  { %35 = vperm.xlu1 %72, %v13_v1   ;;  %v33_v11 = vand.u32 127, %v32_v8  ;;  %s82_s13 = scalar_lea.vmem %s63_s1, 16  ;;  %s86_s14 = scalar_lea.vmem %s63_s1, 32 }
   0x5   :  { %p83_p0 = scmp.ne.s32.totalorder %s63_s1, %s82_s13  ;;  %p87_p1 = scmp.lt.s32.totalorder %s63_s1, %s63_s1 }
   0x6   :  { %p88_p2 = scmp.lt.s32.totalorder %s86_s14, %s82_s13 }
   0x8   :  { %p89_p3 = por %p88_p2, %p87_p1 }
   0xa   :  { %p90_p4 = pnand %p89_p3, %p83_p0 }
  0x83   :  { %v36_v13 = vpop.permute.xlu1 %35 }
  0x84   :  { %vm37_vm0 = vcmp.eq.s32.totalorder %v33_v11, %v36_v13 }
  0x8f   :  { %v15_v3 = vpop.xlane.xlu0 %14 }
  0x90   :  { %v16_v4 = vsub.f32 %v12_v0, %v15_v3 }
  0x92   :  { %v17_v5 = vmul.f32 1.442695, %v16_v4 }
  0x94   :  { %74 = vpow2.f32 %v17_v5 }
  0x9e   :  { %v75_v6 = vpop.eup %74 }
  0x9f   :  { %19 = vadd.xlane.f32.xlu0 %v75_v6 }
 0x12c   :  { %v20_v7 = vpop.xlane.xlu0 %19 }
 0x12d   :  { %76 = vrcp.f32 %v20_v7 }
 0x137   :  { %v77_v9 = vpop.eup %76 }
 0x138   :  { %v22_v10 = vmul.f32 %v77_v9, %v20_v7 }
 0x13a   :  { %v23_v12 = vsub.f32 2.0, %v22_v10 }
 0x13c   :  { %v24_v14 = vmul.f32 %v77_v9, %v23_v12 }
 0x13e   :  { %v25_v15 = vmul.f32 %v75_v6, %v24_v14 }
 0x140   :  { %v38_v16 = vsel %vm37_vm0, %v25_v15, 0.0  ;;  %v26_v17 = vmul.f32 1.442695, %v25_v15 }
 0x141   :  { %39 = vadd.xlane.f32.xlu0 %v38_v16 }
 0x142   :  { %78 = vpow2.f32 %v26_v17 }
 0x14c   :  { %v79_v18 = vpop.eup %78 }
 0x14d   :  { %28 = vadd.xlane.f32.xlu1 %v79_v18 }
 0x1ce   :  { %v40_v22 = vpop.xlane.xlu0 %39 }
 0x1da   :  { %v29_v19 = vpop.xlane.xlu1 %28 }
 0x1db   :  { %80 = vlog2.f32 %v29_v19 }
 0x1e5   :  { %v81_v20 = vpop.eup %80 }
 0x1e6   :  { %v31_v21 = vmul.f32 0.6931472, %v81_v20 }
 0x1e8   :  { %v41_v23 = vsub.f32 %v31_v21, %v40_v22 }
 0x1ea   :  { %v49_v24 = vrot.slane %v41_v23, 4 }
 0x1ec   :  { %v50_v25 = vadd.f32 %v49_v24, %v41_v23 }
 0x1ee   :  { %v51_v26 = vrot.slane %v50_v25, 2 }
 0x1f0   :  { %v52_v27 = vadd.f32 %v51_v26, %v50_v25 }
 0x1f2   :  { %v53_v28 = vrot.slane %v52_v27, 1 }
 0x1f4   :  { %v54_v29 = vadd.f32 %v53_v28, %v52_v27 }
 0x1f6   :  { %55 = vst [vmem:[#allocation2] sm:$0x1] %v54_v29 }
 0x1f7   :  { %93 = shalt.err (!%p90_p4)
}
 0x1f8   :  { %s94_s17 = scalar_lea.hbm %s143_s2, 16 }
 0x1f9   :  { %p95_p5 = scmp.ne.s32.totalorder %s143_s2, %s94_s17  ;;  %p98_p6 = scmp.lt.u32.totalorder %s94_s17, %s143_s2 }
 0x1fb   :  { %p100_p7 = pnand %p98_p6, %p95_p5 }
 0x1fd   :  { %103 = shalt.err (!%p100_p7)
}
 0x1fe   :  { %65 = dma.vmem_to_hbm [thread:$0]  %s63_s1, 16, %s143_s2, [#allocation3]  }
 0x1ff   :  { %104 = dma.done.wait [#allocation3], 16  }
 0x200   :  { %105 = vsyncadd [#allocation3], 4294967280 }
 0x201   :  { %69 = vsyncpa [#allocation3], 1 }

</bundles_post_ra>
